<compile_context>
chip_gen: v7x
topology: tpu7x:2x2x1
jax: 0.10.0
libtpu: 0.0.40
codegen_flags: <defaults>
</compile_context>

<pallas_src>
import functools

import jax
import jax.numpy as jnp
from jax.experimental import pallas as pl
from jax.experimental.pallas import tpu as pltpu


def _attention_fusion_kernel(pre_ref, post_ref, w1_ref, b1_ref, w2_ref, b2_ref,
                             out_ref, xs_ref, *, H, W, off):
    # pre_ref / post_ref : (1, C, H*W) f32  (spatial flattened onto the lane axis)
    # w1_ref             : (9, C, 2C)       3x3 conv taps (t = kh*3 + kw), BN folded in
    # b1_ref             : (C, 1)           conv bias + BN shift (folded)
    # w2_ref             : (C, 1)           1x1 conv weight
    # b2_ref             : (1,)             1x1 conv bias (SMEM scalar)
    # out_ref            : (1, C, H*W)
    # xs_ref             : (2C, L)          zero-padded VMEM staging scratch
    _, C, HW = pre_ref.shape

    # Stage pre (rows [0:C]) and post (rows [C:2C]) into the zero-padded scratch at a
    # lane-aligned offset.  The zero margins provide the conv's zero padding along H
    # (rows h = -1 and h = H fall entirely inside the zeros).
    xs_ref[...] = jnp.zeros_like(xs_ref)
    xs_ref[pl.ds(0, C), pl.ds(off, HW)] = pre_ref[0]
    xs_ref[pl.ds(C, C), pl.ds(off, HW)] = post_ref[0]

    # Column index (w) of each output position along the lane axis, for W-edge masks.
    wpos = jax.lax.broadcasted_iota(jnp.int32, (1, HW), 1) % W

    # 3x3 conv (2C -> C): 9 shifted taps, grouped by kw so only two masks are needed.
    acc = jnp.zeros((C, HW), jnp.float32)
    for kw in range(3):
        part = jnp.zeros((C, HW), jnp.float32)
        for kh in range(3):
            t = kh * 3 + kw
            start = off + (kh - 1) * W + (kw - 1)
            patch = xs_ref[:, pl.ds(start, HW)]          # (2C, HW) shifted tap
            part = part + jnp.dot(w1_ref[t], patch,
                                  preferred_element_type=jnp.float32)
        if kw == 0:       # tap looked one column left: invalid where w == 0
            part = jnp.where(wpos != 0, part, 0.0)
        elif kw == 2:     # tap looked one column right: invalid where w == W-1
            part = jnp.where(wpos != W - 1, part, 0.0)
        acc = acc + part

    # Conv bias + BatchNorm already folded into w1/b1 by the wrapper; add + ReLU.
    h = jnp.maximum(acc + b1_ref[...], 0.0)              # (C, HW)

    # 1x1 conv (C -> 1) as a lane-dense sublane reduction, then sigmoid.
    logit = jnp.sum(h * w2_ref[...], axis=0, keepdims=True) + b2_ref[0]
    attn = jax.nn.sigmoid(logit)                         # (1, HW)

    # Fused output: out = pre + post * attn  (trailing dim = HW -> unmasked stores).
    out_ref[0] = pre_ref[0] + post_ref[0] * attn


def attention_fusion(pre_nchw, post_nchw, params, eps=1e-5):
    """pre_nchw, post_nchw: (B, C, H, W) float32. Returns (B, C, H, W)."""
    if pre_nchw.shape[2:] != post_nchw.shape[2:]:
        raise NotImplementedError(
            "TODO(synk): bilinear-resize branch for mismatched spatial sizes")
    B, C, H, W = pre_nchw.shape
    HW = H * W

    # NCHW with H,W flattened is already channels-on-sublanes / spatial-on-lanes:
    # these reshapes are metadata-only (no transpose / concat / pad HBM traffic).
    pre = pre_nchw.reshape(B, C, HW).astype(jnp.float32)
    post = post_nchw.reshape(B, C, HW).astype(jnp.float32)

    # Lane-aligned front/back margin of the staging scratch; must cover the W+1 halo.
    off = ((W + 1 + 127) // 128) * 128
    L = off + HW + off

    # Fold BatchNorm (inference) and the conv bias into the 3x3 conv weights.
    scale = params['gamma'] / jnp.sqrt(params['rv'] + eps)                  # (C,)
    w1 = jnp.transpose(params['w1'], (2, 3, 0, 1)).reshape(9, C, 2 * C)     # (t, cout, cin)
    w1f = (w1 * scale[None, :, None]).astype(jnp.float32)
    b1f = (params['b1'] * scale + params['beta'] - params['rm'] * scale)
    b1f = b1f.reshape(C, 1).astype(jnp.float32)
    w2c = params['w2'].reshape(C, 1).astype(jnp.float32)                    # (cin, 1)
    b2 = params['b2'].reshape(1).astype(jnp.float32)

    kernel = functools.partial(_attention_fusion_kernel, H=H, W=W, off=off)
    out = pl.pallas_call(
        kernel,
        out_shape=jax.ShapeDtypeStruct((B, C, HW), jnp.float32),
        grid_spec=pltpu.PrefetchScalarGridSpec(
            num_scalar_prefetch=0,
            grid=(B,),
            in_specs=[
                pl.BlockSpec((1, C, HW), lambda b: (b, 0, 0)),          # pre
                pl.BlockSpec((1, C, HW), lambda b: (b, 0, 0)),          # post
                pl.BlockSpec((9, C, 2 * C), lambda b: (0, 0, 0)),       # w1 (folded)
                pl.BlockSpec((C, 1), lambda b: (0, 0)),                 # b1 (folded)
                pl.BlockSpec((C, 1), lambda b: (0, 0)),                 # w2
                pl.BlockSpec(memory_space=pltpu.MemorySpace.SMEM),      # b2 scalar
            ],
            out_specs=pl.BlockSpec((1, C, HW), lambda b: (b, 0, 0)),
            scratch_shapes=[pltpu.VMEM((2 * C, L), jnp.float32)],
        ),
        compiler_params=pltpu.CompilerParams(
            dimension_semantics=("parallel",),
            vmem_limit_bytes=32 * 1024 * 1024,
        ),
    )(pre, post, w1f, b1f, w2c, b2)

    return out.reshape(B, C, H, W)


def _reference_nchw(pre, post, params, eps=1e-5):
    """Pure-JAX reference (NCHW, matches PyTorch eval-mode forward)."""
    x = jnp.concatenate([pre, post], axis=1)
    y = jax.lax.conv_general_dilated(
        x, params['w1'], (1, 1), 'SAME',
        dimension_numbers=('NCHW', 'OIHW', 'NCHW'))
    y = y + params['b1'][None, :, None, None]
    inv_std = 1.0 / jnp.sqrt(params['rv'] + eps)
    scale = params['gamma'] * inv_std
    shift = params['beta'] - params['rm'] * scale
    y = y * scale[None, :, None, None] + shift[None, :, None, None]
    y = jnp.maximum(y, 0.0)
    a = jax.lax.conv_general_dilated(
        y, params['w2'], (1, 1), 'SAME',
        dimension_numbers=('NCHW', 'OIHW', 'NCHW'))
    a = a + params['b2'][None, :, None, None]
    a = jax.nn.sigmoid(a)
    return pre + post * a


if __name__ == "__main__":
    key = jax.random.PRNGKey(0)
    ks = jax.random.split(key, 10)
    B, C, H, W = 2, 4, 16, 16
    C2 = 2 * C

    pre = jax.random.normal(ks[0], (B, C, H, W), jnp.float32)
    post = jax.random.normal(ks[1], (B, C, H, W), jnp.float32)

    # Deterministic synthetic parameters (shapes match nn.Conv2d / nn.BatchNorm2d).
    params = dict(
        w1=0.1 * jax.random.normal(ks[2], (C, C2, 3, 3), jnp.float32),
        b1=0.1 * jax.random.normal(ks[3], (C,), jnp.float32),
        gamma=1.0 + 0.1 * jax.random.normal(ks[4], (C,), jnp.float32),
        beta=0.1 * jax.random.normal(ks[5], (C,), jnp.float32),
        rm=0.1 * jax.random.normal(ks[6], (C,), jnp.float32),
        rv=jnp.abs(jax.random.normal(ks[7], (C,), jnp.float32)) + 0.5,
        w2=0.1 * jax.random.normal(ks[8], (1, C, 1, 1), jnp.float32),
        b2=0.1 * jax.random.normal(ks[9], (1,), jnp.float32),
    )

    out = attention_fusion(pre, post, params)
    out = jax.block_until_ready(out)

    ref = _reference_nchw(pre, post, params)
    max_err = float(jnp.max(jnp.abs(out - ref)))
    assert jnp.allclose(out, ref, atol=1e-4, rtol=1e-4), f"max_err={max_err}"
    print("KERNEL_OK")
</pallas_src>

<mosaic_0001>
module attributes {stable_mosaic.version = 11 : i64} {
  func.func @_attention_fusion_kernel(%arg0: i32, %arg1: memref<1x4x256xf32, #tpu.memory_space<vmem>>, %arg2: memref<1x4x256xf32, #tpu.memory_space<vmem>>, %arg3: memref<9x4x8xf32, #tpu.memory_space<vmem>>, %arg4: memref<4x1xf32, #tpu.memory_space<vmem>>, %arg5: memref<4x1xf32, #tpu.memory_space<vmem>>, %arg6: memref<1xf32, #tpu.memory_space<smem>>, %arg7: memref<1x4x256xf32, #tpu.memory_space<vmem>>, %arg8: memref<8x512xf32, #tpu.memory_space<vmem>>) attributes {dimension_semantics = [#tpu.dimension_semantics<parallel>], iteration_bounds = array<i64: 2>, scalar_prefetch = 0 : i64, scratch_operands = 1 : i64, tpu.core_type = #tpu.core_type<tc>, window_params = [{transform_indices = @transform_0, window_bounds = array<i64: 1, 4, 256>}, {transform_indices = @transform_1, window_bounds = array<i64: 1, 4, 256>}, {pipeline_mode = #tpu.pipeline_mode<synchronous>, transform_indices = @transform_2, window_bounds = array<i64: 9, 4, 8>}, {pipeline_mode = #tpu.pipeline_mode<synchronous>, transform_indices = @transform_3, window_bounds = array<i64: 4, 1>}, {pipeline_mode = #tpu.pipeline_mode<synchronous>, transform_indices = @transform_4, window_bounds = array<i64: 4, 1>}, {transform_indices = @transform_5, window_bounds = array<i64: 1>}, {transform_indices = @transform_6, window_bounds = array<i64: 1, 4, 256>}]} {
    %cst = arith.constant 0.000000e+00 : f32
    %0 = vector.broadcast %cst : f32 to vector<8x512xf32>
    %c0 = arith.constant 0 : index
    %c0_0 = arith.constant 0 : index
    %1 = vector.load %arg8[%c0, %c0_0] : memref<8x512xf32, #tpu.memory_space<vmem>>, vector<8x512xf32>
    tpu.vector_store %arg8[%c0, %c0_0], %0 {strides = array<i32>} : memref<8x512xf32, #tpu.memory_space<vmem>>, vector<8x512xf32>,
    %c0_1 = arith.constant 0 : index
    %c0_2 = arith.constant 0 : index
    %c0_3 = arith.constant 0 : index
    %2 = vector.load %arg1[%c0_1, %c0_2, %c0_3] : memref<1x4x256xf32, #tpu.memory_space<vmem>>, vector<1x4x256xf32>
    %3 = vector.shape_cast %2 : vector<1x4x256xf32> to vector<4x256xf32>
    %c0_4 = arith.constant 0 : index
    %c128 = arith.constant 128 : index
    %4 = vector.load %arg8[%c0_4, %c128] : memref<8x512xf32, #tpu.memory_space<vmem>>, vector<4x256xf32>
    tpu.vector_store %arg8[%c0_4, %c128], %3 {strides = array<i32>} : memref<8x512xf32, #tpu.memory_space<vmem>>, vector<4x256xf32>,
    %c0_5 = arith.constant 0 : index
    %c0_6 = arith.constant 0 : index
    %c0_7 = arith.constant 0 : index
    %5 = vector.load %arg2[%c0_5, %c0_6, %c0_7] : memref<1x4x256xf32, #tpu.memory_space<vmem>>, vector<1x4x256xf32>
    %6 = vector.shape_cast %5 : vector<1x4x256xf32> to vector<4x256xf32>
    %c4 = arith.constant 4 : index
    %c128_8 = arith.constant 128 : index
    %7 = vector.load %arg8[%c4, %c128_8] : memref<8x512xf32, #tpu.memory_space<vmem>>, vector<4x256xf32>
    tpu.vector_store %arg8[%c4, %c128_8], %6 {strides = array<i32>} : memref<8x512xf32, #tpu.memory_space<vmem>>, vector<4x256xf32>,
    %8 = tpu.iota {dimensions = array<i32: 1>} : vector<1x256xi32>
    %c16_i32 = arith.constant 16 : i32
    %c0_i32 = arith.constant 0 : i32
    %9 = arith.cmpi eq, %c16_i32, %c0_i32 : i32
    %c1_i32 = arith.constant 1 : i32
    %10 = arith.select %9, %c1_i32, %c16_i32 : i32
    %11 = vector.broadcast %10 : i32 to vector<1x256xi32>
    %12 = arith.remsi %8, %11 : vector<1x256xi32>
    %c0_i32_9 = arith.constant 0 : i32
    %13 = vector.broadcast %c0_i32_9 : i32 to vector<1x256xi32>
    %14 = arith.cmpi ne, %12, %13 : vector<1x256xi32>
    %c0_i32_10 = arith.constant 0 : i32
    %15 = vector.broadcast %c0_i32_10 : i32 to vector<1x256xi32>
    %16 = arith.cmpi slt, %12, %15 : vector<1x256xi32>
    %c0_i32_11 = arith.constant 0 : i32
    %17 = arith.cmpi slt, %10, %c0_i32_11 : i32
    %18 = vector.broadcast %17 : i1 to vector<1x256xi1>
    %19 = vector.broadcast %18 : vector<1x256xi1> to vector<1x256xi1>
    %20 = arith.xori %16, %19 : vector<1x256xi1>
    %21 = arith.andi %20, %14 : vector<1x256xi1>
    %22 = vector.broadcast %10 : i32 to vector<1x256xi32>
    %23 = arith.addi %12, %22 : vector<1x256xi32>
    %24 = arith.select %21, %23, %12 : vector<1x256xi1>, vector<1x256xi32>
    %cst_12 = arith.constant 0.000000e+00 : f32
    %25 = vector.broadcast %cst_12 : f32 to vector<4x256xf32>
    %cst_13 = arith.constant 0.000000e+00 : f32
    %26 = vector.broadcast %cst_13 : f32 to vector<4x256xf32>
    %c0_14 = arith.constant 0 : index
    %c111 = arith.constant 111 : index
    %27 = vector.load %arg8[%c0_14, %c111] : memref<8x512xf32, #tpu.memory_space<vmem>>, vector<8x256xf32>
    %c0_15 = arith.constant 0 : index
    %c0_16 = arith.constant 0 : index
    %c0_17 = arith.constant 0 : index
    %28 = vector.load %arg3[%c0_15, %c0_16, %c0_17] : memref<9x4x8xf32, #tpu.memory_space<vmem>>, vector<1x4x8xf32>
    %29 = vector.shape_cast %28 : vector<1x4x8xf32> to vector<4x8xf32>
    %cst_18 = arith.constant dense<0.000000e+00> : vector<4x256xf32>
    %30 = tpu.matmul %29, %27, %cst_18 {dimension_numbers = #tpu.dot_dimension_numbers<[1], [0], [0], [1], [0, 0, 1, 1], [], []>} : vector<4x8xf32>, vector<8x256xf32>, vector<4x256xf32> -> vector<4x256xf32>
    %31 = arith.addf %26, %30 : vector<4x256xf32>
    %c0_19 = arith.constant 0 : index
    %c127 = arith.constant 127 : index
    %32 = vector.load %arg8[%c0_19, %c127] : memref<8x512xf32, #tpu.memory_space<vmem>>, vector<8x256xf32>
    %c3 = arith.constant 3 : index
    %c0_20 = arith.constant 0 : index
    %c0_21 = arith.constant 0 : index
    %33 = vector.load %arg3[%c3, %c0_20, %c0_21] : memref<9x4x8xf32, #tpu.memory_space<vmem>>, vector<1x4x8xf32>
    %34 = vector.shape_cast %33 : vector<1x4x8xf32> to vector<4x8xf32>
    %cst_22 = arith.constant dense<0.000000e+00> : vector<4x256xf32>
    %35 = tpu.matmul %34, %32, %cst_22 {dimension_numbers = #tpu.dot_dimension_numbers<[1], [0], [0], [1], [0, 0, 1, 1], [], []>} : vector<4x8xf32>, vector<8x256xf32>, vector<4x256xf32> -> vector<4x256xf32>
    %36 = arith.addf %31, %35 : vector<4x256xf32>
    %c0_23 = arith.constant 0 : index
    %c143 = arith.constant 143 : index
    %37 = vector.load %arg8[%c0_23, %c143] : memref<8x512xf32, #tpu.memory_space<vmem>>, vector<8x256xf32>
    %c6 = arith.constant 6 : index
    %c0_24 = arith.constant 0 : index
    %c0_25 = arith.constant 0 : index
    %38 = vector.load %arg3[%c6, %c0_24, %c0_25] : memref<9x4x8xf32, #tpu.memory_space<vmem>>, vector<1x4x8xf32>
    %39 = vector.shape_cast %38 : vector<1x4x8xf32> to vector<4x8xf32>
    %cst_26 = arith.constant dense<0.000000e+00> : vector<4x256xf32>
    %40 = tpu.matmul %39, %37, %cst_26 {dimension_numbers = #tpu.dot_dimension_numbers<[1], [0], [0], [1], [0, 0, 1, 1], [], []>} : vector<4x8xf32>, vector<8x256xf32>, vector<4x256xf32> -> vector<4x256xf32>
    %41 = arith.addf %36, %40 : vector<4x256xf32>
    %c0_i32_27 = arith.constant 0 : i32
    %42 = vector.broadcast %c0_i32_27 : i32 to vector<1x256xi32>
    %43 = arith.cmpi ne, %24, %42 : vector<1x256xi32>
    %cst_28 = arith.constant 0.000000e+00 : f32
    %44 = vector.shape_cast %43 : vector<1x256xi1> to vector<1x256xi1>
    %45 = vector.broadcast %44 : vector<1x256xi1> to vector<4x256xi1>
    %46 = vector.broadcast %cst_28 : f32 to vector<4x256xf32>
    %47 = arith.select %45, %41, %46 : vector<4x256xi1>, vector<4x256xf32>
    %48 = arith.addf %25, %47 : vector<4x256xf32>
    %cst_29 = arith.constant 0.000000e+00 : f32
    %49 = vector.broadcast %cst_29 : f32 to vector<4x256xf32>
    %c0_30 = arith.constant 0 : index
    %c112 = arith.constant 112 : index
    %50 = vector.load %arg8[%c0_30, %c112] : memref<8x512xf32, #tpu.memory_space<vmem>>, vector<8x256xf32>
    %c1 = arith.constant 1 : index
    %c0_31 = arith.constant 0 : index
    %c0_32 = arith.constant 0 : index
    %51 = vector.load %arg3[%c1, %c0_31, %c0_32] : memref<9x4x8xf32, #tpu.memory_space<vmem>>, vector<1x4x8xf32>
    %52 = vector.shape_cast %51 : vector<1x4x8xf32> to vector<4x8xf32>
    %cst_33 = arith.constant dense<0.000000e+00> : vector<4x256xf32>
    %53 = tpu.matmul %52, %50, %cst_33 {dimension_numbers = #tpu.dot_dimension_numbers<[1], [0], [0], [1], [0, 0, 1, 1], [], []>} : vector<4x8xf32>, vector<8x256xf32>, vector<4x256xf32> -> vector<4x256xf32>
    %54 = arith.addf %49, %53 : vector<4x256xf32>
    %c0_34 = arith.constant 0 : index
    %c128_35 = arith.constant 128 : index
    %55 = vector.load %arg8[%c0_34, %c128_35] : memref<8x512xf32, #tpu.memory_space<vmem>>, vector<8x256xf32>
    %c4_36 = arith.constant 4 : index
    %c0_37 = arith.constant 0 : index
    %c0_38 = arith.constant 0 : index
    %56 = vector.load %arg3[%c4_36, %c0_37, %c0_38] : memref<9x4x8xf32, #tpu.memory_space<vmem>>, vector<1x4x8xf32>
    %57 = vector.shape_cast %56 : vector<1x4x8xf32> to vector<4x8xf32>
    %cst_39 = arith.constant dense<0.000000e+00> : vector<4x256xf32>
    %58 = tpu.matmul %57, %55, %cst_39 {dimension_numbers = #tpu.dot_dimension_numbers<[1], [0], [0], [1], [0, 0, 1, 1], [], []>} : vector<4x8xf32>, vector<8x256xf32>, vector<4x256xf32> -> vector<4x256xf32>
    %59 = arith.addf %54, %58 : vector<4x256xf32>
    %c0_40 = arith.constant 0 : index
    %c144 = arith.constant 144 : index
    %60 = vector.load %arg8[%c0_40, %c144] : memref<8x512xf32, #tpu.memory_space<vmem>>, vector<8x256xf32>
    %c7 = arith.constant 7 : index
    %c0_41 = arith.constant 0 : index
    %c0_42 = arith.constant 0 : index
    %61 = vector.load %arg3[%c7, %c0_41, %c0_42] : memref<9x4x8xf32, #tpu.memory_space<vmem>>, vector<1x4x8xf32>
    %62 = vector.shape_cast %61 : vector<1x4x8xf32> to vector<4x8xf32>
    %cst_43 = arith.constant dense<0.000000e+00> : vector<4x256xf32>
    %63 = tpu.matmul %62, %60, %cst_43 {dimension_numbers = #tpu.dot_dimension_numbers<[1], [0], [0], [1], [0, 0, 1, 1], [], []>} : vector<4x8xf32>, vector<8x256xf32>, vector<4x256xf32> -> vector<4x256xf32>
    %64 = arith.addf %59, %63 : vector<4x256xf32>
    %65 = arith.addf %48, %64 : vector<4x256xf32>
    %cst_44 = arith.constant 0.000000e+00 : f32
    %66 = vector.broadcast %cst_44 : f32 to vector<4x256xf32>
    %c0_45 = arith.constant 0 : index
    %c113 = arith.constant 113 : index
    %67 = vector.load %arg8[%c0_45, %c113] : memref<8x512xf32, #tpu.memory_space<vmem>>, vector<8x256xf32>
    %c2 = arith.constant 2 : index
    %c0_46 = arith.constant 0 : index
    %c0_47 = arith.constant 0 : index
    %68 = vector.load %arg3[%c2, %c0_46, %c0_47] : memref<9x4x8xf32, #tpu.memory_space<vmem>>, vector<1x4x8xf32>
    %69 = vector.shape_cast %68 : vector<1x4x8xf32> to vector<4x8xf32>
    %cst_48 = arith.constant dense<0.000000e+00> : vector<4x256xf32>
    %70 = tpu.matmul %69, %67, %cst_48 {dimension_numbers = #tpu.dot_dimension_numbers<[1], [0], [0], [1], [0, 0, 1, 1], [], []>} : vector<4x8xf32>, vector<8x256xf32>, vector<4x256xf32> -> vector<4x256xf32>
    %71 = arith.addf %66, %70 : vector<4x256xf32>
    %c0_49 = arith.constant 0 : index
    %c129 = arith.constant 129 : index
    %72 = vector.load %arg8[%c0_49, %c129] : memref<8x512xf32, #tpu.memory_space<vmem>>, vector<8x256xf32>
    %c5 = arith.constant 5 : index
    %c0_50 = arith.constant 0 : index
    %c0_51 = arith.constant 0 : index
    %73 = vector.load %arg3[%c5, %c0_50, %c0_51] : memref<9x4x8xf32, #tpu.memory_space<vmem>>, vector<1x4x8xf32>
    %74 = vector.shape_cast %73 : vector<1x4x8xf32> to vector<4x8xf32>
    %cst_52 = arith.constant dense<0.000000e+00> : vector<4x256xf32>
    %75 = tpu.matmul %74, %72, %cst_52 {dimension_numbers = #tpu.dot_dimension_numbers<[1], [0], [0], [1], [0, 0, 1, 1], [], []>} : vector<4x8xf32>, vector<8x256xf32>, vector<4x256xf32> -> vector<4x256xf32>
    %76 = arith.addf %71, %75 : vector<4x256xf32>
    %c0_53 = arith.constant 0 : index
    %c145 = arith.constant 145 : index
    %77 = vector.load %arg8[%c0_53, %c145] : memref<8x512xf32, #tpu.memory_space<vmem>>, vector<8x256xf32>
    %c8 = arith.constant 8 : index
    %c0_54 = arith.constant 0 : index
    %c0_55 = arith.constant 0 : index
    %78 = vector.load %arg3[%c8, %c0_54, %c0_55] : memref<9x4x8xf32, #tpu.memory_space<vmem>>, vector<1x4x8xf32>
    %79 = vector.shape_cast %78 : vector<1x4x8xf32> to vector<4x8xf32>
    %cst_56 = arith.constant dense<0.000000e+00> : vector<4x256xf32>
    %80 = tpu.matmul %79, %77, %cst_56 {dimension_numbers = #tpu.dot_dimension_numbers<[1], [0], [0], [1], [0, 0, 1, 1], [], []>} : vector<4x8xf32>, vector<8x256xf32>, vector<4x256xf32> -> vector<4x256xf32>
    %81 = arith.addf %76, %80 : vector<4x256xf32>
    %c15_i32 = arith.constant 15 : i32
    %82 = vector.broadcast %c15_i32 : i32 to vector<1x256xi32>
    %83 = arith.cmpi ne, %24, %82 : vector<1x256xi32>
    %cst_57 = arith.constant 0.000000e+00 : f32
    %84 = vector.shape_cast %83 : vector<1x256xi1> to vector<1x256xi1>
    %85 = vector.broadcast %84 : vector<1x256xi1> to vector<4x256xi1>
    %86 = vector.broadcast %cst_57 : f32 to vector<4x256xf32>
    %87 = arith.select %85, %81, %86 : vector<4x256xi1>, vector<4x256xf32>
    %88 = arith.addf %65, %87 : vector<4x256xf32>
    %c0_58 = arith.constant 0 : index
    %c0_59 = arith.constant 0 : index
    %89 = vector.load %arg4[%c0_58, %c0_59] : memref<4x1xf32, #tpu.memory_space<vmem>>, vector<4x1xf32>
    %90 = vector.broadcast %89 : vector<4x1xf32> to vector<4x256xf32>
    %91 = arith.addf %88, %90 : vector<4x256xf32>
    %cst_60 = arith.constant 0.000000e+00 : f32
    %92 = vector.broadcast %cst_60 : f32 to vector<4x256xf32>
    %93 = arith.maximumf %91, %92 : vector<4x256xf32>
    %c0_61 = arith.constant 0 : index
    %c0_62 = arith.constant 0 : index
    %94 = vector.load %arg5[%c0_61, %c0_62] : memref<4x1xf32, #tpu.memory_space<vmem>>, vector<4x1xf32>
    %95 = vector.broadcast %94 : vector<4x1xf32> to vector<4x256xf32>
    %96 = arith.mulf %93, %95 : vector<4x256xf32>
    %cst_63 = arith.constant dense<0.000000e+00> : vector<256xf32>
    %97 = vector.multi_reduction <add>, %96, %cst_63 [0] : vector<4x256xf32> to vector<256xf32>
    %98 = vector.shape_cast %97 : vector<256xf32> to vector<1x256xf32>
    %c0_64 = arith.constant 0 : index
    %99 = memref.load %arg6[%c0_64] : memref<1xf32, #tpu.memory_space<smem>>
    %100 = vector.broadcast %99 : f32 to vector<1x256xf32>
    %101 = arith.addf %98, %100 : vector<1x256xf32>
    %102 = arith.negf %101 : vector<1x256xf32>
    %103 = math.exp %102 : vector<1x256xf32>
    %cst_65 = arith.constant 1.000000e+00 : f32
    %104 = vector.broadcast %cst_65 : f32 to vector<1x256xf32>
    %105 = arith.addf %104, %103 : vector<1x256xf32>
    %106 = arith.divf %104, %105 : vector<1x256xf32>
    %c0_66 = arith.constant 0 : index
    %c0_67 = arith.constant 0 : index
    %c0_68 = arith.constant 0 : index
    %107 = vector.load %arg1[%c0_66, %c0_67, %c0_68] : memref<1x4x256xf32, #tpu.memory_space<vmem>>, vector<1x4x256xf32>
    %108 = vector.shape_cast %107 : vector<1x4x256xf32> to vector<4x256xf32>
    %c0_69 = arith.constant 0 : index
    %c0_70 = arith.constant 0 : index
    %c0_71 = arith.constant 0 : index
    %109 = vector.load %arg2[%c0_69, %c0_70, %c0_71] : memref<1x4x256xf32, #tpu.memory_space<vmem>>, vector<1x4x256xf32>
    %110 = vector.shape_cast %109 : vector<1x4x256xf32> to vector<4x256xf32>
    %111 = vector.broadcast %106 : vector<1x256xf32> to vector<4x256xf32>
    %112 = arith.mulf %110, %111 : vector<4x256xf32>
    %113 = arith.addf %108, %112 : vector<4x256xf32>
    %c0_72 = arith.constant 0 : index
    %c0_73 = arith.constant 0 : index
    %c0_74 = arith.constant 0 : index
    %114 = vector.load %arg7[%c0_72, %c0_73, %c0_74] : memref<1x4x256xf32, #tpu.memory_space<vmem>>, vector<1x4x256xf32>
    %115 = vector.shape_cast %114 : vector<1x4x256xf32> to vector<4x256xf32>
    %116 = vector.shape_cast %113 : vector<4x256xf32> to vector<1x4x256xf32>
    tpu.vector_store %arg7[%c0_72, %c0_73, %c0_74], %116 {strides = array<i32>} : memref<1x4x256xf32, #tpu.memory_space<vmem>>, vector<1x4x256xf32>,
    return
  }
  func.func @transform_0(%arg0: i32) -> (i32, i32, i32) {
    %c0_i32 = arith.constant 0 : i32
    %c0_i32_0 = arith.constant 0 : i32
    %c0_i32_1 = arith.constant 0 : i32
    return %arg0, %c0_i32, %c0_i32_0 : i32, i32, i32
  }
  func.func @transform_1(%arg0: i32) -> (i32, i32, i32) {
    %c0_i32 = arith.constant 0 : i32
    %c0_i32_0 = arith.constant 0 : i32
    %c0_i32_1 = arith.constant 0 : i32
    return %arg0, %c0_i32, %c0_i32_0 : i32, i32, i32
  }
  func.func @transform_2(%arg0: i32) -> (i32, i32, i32) {
    %c0_i32 = arith.constant 0 : i32
    %c0_i32_0 = arith.constant 0 : i32
    %c0_i32_1 = arith.constant 0 : i32
    %c0_i32_2 = arith.constant 0 : i32
    return %c0_i32, %c0_i32_0, %c0_i32_1 : i32, i32, i32
  }
  func.func @transform_3(%arg0: i32) -> (i32, i32) {
    %c0_i32 = arith.constant 0 : i32
    %c0_i32_0 = arith.constant 0 : i32
    %c0_i32_1 = arith.constant 0 : i32
    return %c0_i32, %c0_i32_0 : i32, i32
  }
  func.func @transform_4(%arg0: i32) -> (i32, i32) {
    %c0_i32 = arith.constant 0 : i32
    %c0_i32_0 = arith.constant 0 : i32
    %c0_i32_1 = arith.constant 0 : i32
    return %c0_i32, %c0_i32_0 : i32, i32
  }
  func.func @transform_5(%arg0: i32) -> i32 {
    %c0_i32 = arith.constant 0 : i32
    %c0_i32_0 = arith.constant 0 : i32
    return %c0_i32 : i32
  }
  func.func @transform_6(%arg0: i32) -> (i32, i32, i32) {
    %c0_i32 = arith.constant 0 : i32
    %c0_i32_0 = arith.constant 0 : i32
    %c0_i32_1 = arith.constant 0 : i32
    return %arg0, %c0_i32, %c0_i32_0 : i32, i32, i32
  }
}

</mosaic_0001>

<bundles_post_ra>
// kernel: tpu_custom_call.1
= control target key start
LH: loop header
LB: loop body
LE: loop exit
PB: predicated region body
PF: predicated region fallthrough
CT: control target
= control target key end

     0   :  { %s1679_s0 = inlined_call_operand.vmem [shape: f32[2,4,256], index: 0, kind: input, shape index: {}]   ;;  %s1680_s1 = inlined_call_operand.vmem [shape: f32[2,4,256], index: 1, kind: input, shape index: {}]   ;;  %s1681_s2 = inlined_call_operand.vmem [shape: f32[9,4,8], index: 2, kind: input, shape index: {}]   ;;  %s1682_s3 = inlined_call_operand.vmem [shape: f32[4,1], index: 3, kind: input, shape index: {}]   ;;  %s1683_s4 = inlined_call_operand.vmem [shape: f32[4,1], index: 4, kind: input, shape index: {}]   ;;  %s1684_s5 = inlined_call_operand.<no memory space> [shape: f32[1], index: 5, kind: input, shape index: {}]   ;;  %s1685_s6 = inlined_call_operand.hbm [shape: f32[2,4,256], index: 6, kind: output, shape index: {}]  }
   0x1   :  { %11 = sst [smem:[#allocation3]] %s1684_s5 }
   0x2   :  { %12 = vsyncpa [#allocation5], 0 }
   0x3   :  { %14 = vsyncpa [#allocation5 + $0x1], 0  ;;  %s1492_s23 = smov 0   ;;  %s1494_s24 = smov 0  }
   0x4   :  { %s1496_s25 = smov 0   ;;  %s1498_s26 = smov 0  }
   0x5 LB: > { %s1513_s5 = sadd.s32 4294967295, %s1441_s26   ;;  %s1270_s27 = sadd.s32 4294967294, %s1441_s26   ;;  %s1441_s26 = sphi %s1498_s26, %s1691_s26   ;;  %s1437_s25 = sphi %s1496_s25, %s1690_s25   ;;  %s1433_s24 = sphi %s1494_s24, %s1689_s24   ;;  %s1429_s23 = sphi %s1492_s23, %s1688_s23  }
   0x6   : > { %s1517_s28 = sadd.s32 1, %s1441_s26   ;;  %s163_s29 = sadd.s32 1, %s1437_s25 }
   0x7   : > { %s160_s30 = ssub.s32 %s1441_s26, %s1517_s28  ;;  %p173_p0 = scmp.ne.s32.totalorder %s1437_s25, %s1433_s24 }
   0x8   : > { %p161_p1 = scmp.eq.s32.totalorder %s160_s30, 0  ;;  %p174_p2 = scmp.eq.s32.totalorder %s1513_s5, 1 }
   0x9   : > { %p179_p3 = scmp.ne.s32.totalorder %s1433_s24, %s1429_s23  ;;  %p180_p4 = scmp.eq.s32.totalorder %s1270_s27, 1 }
   0xa   : > { %s1528_s7 = scalar_select %p161_p1, %s1437_s25, %s163_s29  }
   0xb   : > { %p1530_p5 = por %p174_p2, %p173_p0  ;;  %p1534_p6 = por %p180_p4, %p179_p3 }
   0xc   : > { %p1273_p7 = scmp.ge.s32.totalorder %s1441_s26, 1  ;;  %p226_p8 = scmp.lt.s32.totalorder %s1441_s26, 3 }
   0xe   : > { %p227_p9 = pnand %p1273_p7, %p226_p8 }
   0xf   : > { %v1443_v0 = vmov (!%p227_p9), 0.0   ;;  %s1444_s10 = smov (!%p227_p9), 17   ;;  %p261_p10 = scmp.lt.s32.totalorder (!%p227_p9), %s1513_s5, 1  ;;  %v1136_v7 = vld [vmem:[%s1683_s4] sm:$0xf] (!%p227_p9)  ;;  %v1452_v8 = vmov (!%p227_p9), 0  }
  0x10   : > { %230 = sbr.rel (%p227_p9) target bundleno = 484 (0x1e4), region = 44  ;;  %409 = vrot.lane.b32.xlu1 (!%p227_p9), %v1443_v0, %s1444_s10  ;;  %272 = vst [vmem:[#allocation2 + $0x8] sm:$0xff] (!%p227_p9), %v1443_v0  ;;  %273 = vst [vmem:[#allocation2 + $0x10] sm:$0xff] (!%p227_p9), %v1443_v0  ;;  %487 = vmatprep.mubr.f32.mxu0 (!%p227_p9), %v1443_v0  ;;  %s1445_s12 = smov (!%p227_p9), 1   ;;  %v1126_v9 = vld [vmem:[%s1682_s3] sm:$0xf] (!%p227_p9) }
  0x11   : > { %402 = vmatprep.mubr.f32.mxu1 (!%p227_p9), %v1443_v0  ;;  %s1446_s20 = smov (!%p227_p9), 113   ;;  %s1447_s21 = smov (!%p227_p9), 127   ;;  %1367 = vset.pattern.permute.xlu0 (!%p227_p9), %v1452_v8  ;;  %vm415_vm0 = vcmask (!%p227_p9), 138240   ;;  %v317_v18 = vld [vmem:[%s1681_s2] sm:$0xf] (!%p227_p9)  ;;  %vm334_vm1 = vcmask (!%p227_p9), 64512  }
  0x12   : > { %s1448_s22 = smov (!%p227_p9), 16   ;;  %s1449_s27 = smov (!%p227_p9), 15   ;;  %1368 = vset.pattern.permute.xlu1 (!%p227_p9), %v1452_v8  ;;  %vm329_vm2 = vcmask (!%p227_p9), 7168   ;;  %v1279_v23 = vld [vmem:[%s1681_s2 + $0xc] sm:$0xf] (!%p227_p9)  ;;  %vm508_vm3 = vcmask (!%p227_p9), 924672  }
  0x13   : > { %s1450_s29 = smov (!%p227_p9), 112   ;;  %s1451_s30 = smov (!%p227_p9), 111   ;;  %v1285_v28 = vld [vmem:[%s1681_s2 + $0x10] sm:$0xf] (!%p227_p9)  ;;  %v1282_v30 = vld [vmem:[%s1681_s2 + $0x18] sm:$0xf] (!%p227_p9) }
  0x14   : > { %323 = vrot.lane.b32.xlu1 (!%p227_p9), %v1443_v0, %s1445_s12  ;;  %vm863_vm4 = vcmask (!%p227_p9), 1039360   ;;  %v1291_v35 = vld [vmem:[%s1681_s2 + $0x14] sm:$0xf] (!%p227_p9)  ;;  %vm683_vm5 = vcmask (!%p227_p9), 130048   ;;  %v1284_v41 = vld [vmem:[%s1681_s2 + $0x4] sm:$0xf] (!%p227_p9) }
  0x15   : > { %vm948_vm6 = vcmask (!%p227_p9), 121856   ;;  %v1290_v46 = vld [vmem:[%s1681_s2 + $0x8] sm:$0xf] (!%p227_p9)  ;;  %vm770_vm7 = vcmask (!%p227_p9), 916480   ;;  %v1288_v52 = vld [vmem:[%s1681_s2 + $0x1c] sm:$0xf] (!%p227_p9) }
  0x16   : > { %vm1035_vm8 = vcmask (!%p227_p9), 908288   ;;  %v1294_v57 = vld [vmem:[%s1681_s2 + $0x20] sm:$0xf] (!%p227_p9)  ;;  %vm1144_vm13 = vcmask (!%p227_p9), 1043456   ;;  %s258_s17 = sand.u32 (!%p227_p9), 1, %s1433_s24  }
  0x17   : > { %s262_s11 = scalar_select %p261_p10, %s1513_s5, 1 }
  0x18   : > { %506 = vrot.lane.b32.xlu1 %v1443_v0, %s1446_s20  ;;  %s1274_s18 = sshll.u32 %s258_s17, 3 }
  0x19   : > { %s1303_s13 = sshll.u32 %s262_s11, 3 }
  0x1a   : > { %s265_s16 = scalar_lea.vmem %s1679_s0, %s1303_s13  ;;  %s270_s19 = scalar_lea.vmem %s1680_s1, %s1303_s13 }
  0x1b   : > { %v1554_v1 = vld [vmem:[%s265_s16] sm:$0xff]  ;;  %s1159_s16 = sld [smem:[#allocation3]] }
  0x1c   : > { %v1556_v2 = vld [vmem:[%s270_s19] sm:$0xff]  ;;  %279 = vst [vmem:[#allocation2 + $0x8] sm:$0xf] %v1554_v1  ;;  %v277_v4 = vcombine.high %v1554_v1, %v1554_v1  ;;  %s1305_s19 = sshll.u32 %s1513_s5, 7  ;;  %s1453_s5 = smov [#allocation4]  }
  0x1d   : > { %v283_v3 = vcombine.low %v1556_v2, %v1556_v2  ;;  %286 = vst [vmem:[#allocation2 + $0x10] sm:$0xf0] %v1556_v2  ;;  %s1383_s11 = sshll.u32 %s1453_s5, 4  ;;  %s1384_s11 = int_to_ptr.vmem [resolvable:$false] %s1383_s11 }
  0x1e   : > { %280 = vst [vmem:[#allocation2 + $0x10] sm:$0xf] %v277_v4 }
  0x1f   : > { %285 = vst [vmem:[#allocation2 + $0x8] sm:$0xf0] %v283_v3  ;;  %v287_v3 = vlaneseq }
  0x21   : > { %v288_v4 = vand.u32 127, %v287_v3 }
  0x25   : > { %v316_v6 = vld [vmem:[#allocation2 + $0x10] sm:$0xff] }
  0x26   : > { %v1565_v5 = vld [vmem:[#allocation2 + $0x8] sm:$0xff] }
  0x27   : > { %411 = vrot.lane.b32.xlu0 %v1565_v5, %s1444_s10  ;;  %325 = vrot.lane.b32.xlu1 %v1565_v5, %s1445_s12 }
  0x2b   : > { %413 = vrot.lane.b32.xlu0 %v316_v6, %s1444_s10  ;;  %859 = vrot.lane.b32.xlu1 %v316_v6, %s1447_s21 }
  0x2f   : > { %327 = vrot.lane.b32.xlu0 %v316_v6, %s1445_s12  ;;  %857 = vrot.lane.b32.xlu1 %v1565_v5, %s1447_s21  ;;  %s1385_s12 = scalar_lea.vmem %s1384_s11, 256 }
  0x33   : > { %504 = vrot.lane.b32.xlu0 %v316_v6, %s1446_s20  ;;  %681 = vrot.lane.b32.xlu1 %v316_v6, %s1448_s22 }
  0x37   : > { %502 = vrot.lane.b32.xlu0 %v1565_v5, %s1446_s20  ;;  %944 = vrot.lane.b32.xlu1 %v1565_v5, %s1449_s27  ;;  %s260_s20 = scalar_lea.vmem [#allocation4], %s1274_s18 }
  0x3b   : > { %861 = vrot.lane.b32.xlu0 %v1443_v0, %s1447_s21  ;;  %942 = vrot.lane.b32.xlu1 %v1443_v0, %s1449_s27  ;;  %s1199_s21 = sshll.u32 %s260_s20, 4  ;;  %s1639_s21 = int_to_ptr.vmem [resolvable:$true] %s1199_s21 }
  0x3c   : > { %s1379_s10 = scalar_lea.vmem %s1639_s21, 128  ;;  %p1386_p0 = scmp.lt.s32.totalorder %s1639_s21, %s1384_s11 }
  0x3d   : > { %p1380_p11 = scmp.ne.s32.totalorder %s1639_s21, %s1379_s10  ;;  %p1387_p1 = scmp.lt.s32.totalorder %s1385_s12, %s1379_s10 }
  0x3f   : > { %679 = vrot.lane.b32.xlu0 %v1565_v5, %s1448_s22  ;;  %768 = vrot.lane.b32.xlu1 %v1443_v0, %s1450_s29  ;;  %p1381_p12 = pnand %p1380_p11, %p1530_p5  ;;  %p1388_p2 = por %p1387_p1, %p1386_p0 }
  0x41   : > { %p1382_p13 = pneg %p1381_p12 }
  0x43   : > { %677 = vrot.lane.b32.xlu0 %v1443_v0, %s1448_s22  ;;  %1031 = vrot.lane.b32.xlu1 %v316_v6, %s1451_s30  ;;  %p1389_p3 = pnand %p1388_p2, %p1382_p13 }
  0x47   : > { %946 = vrot.lane.b32.xlu0 %v316_v6, %s1449_s27  ;;  %1029 = vrot.lane.b32.xlu1 %v1565_v5, %s1451_s30 }
  0x4b   : > { %766 = vrot.lane.b32.xlu0 %v316_v6, %s1450_s29  ;;  %1139 = vperm.xlu1 %1368, %v1136_v7  }
  0x4f   : > { %764 = vrot.lane.b32.xlu0 %v1565_v5, %s1450_s29  ;;  %s1637_s29 = scalar_lea.hbm %s1685_s6, %s1305_s19 }
  0x53   : > { %1033 = vrot.lane.b32.xlu0 %v1443_v0, %s1451_s30  ;;  %s1185_s30 = scalar_lea.sflag [#allocation5], %s258_s17 }
  0x57   : > { %1129 = vperm.xlu0 %1367, %v1126_v9  }
  0x82   : > { %v410_v10 = vpop.permute.xlu1 %409 }
  0x86   : > { %v324_v11 = vpop.permute.xlu1 %323 }
  0x8a   : > { %v507_v12 = vpop.permute.xlu1 %506 }
  0x99   : > { %v412_v13 = vpop.permute.xlu0 %411  ;;  %v326_v14 = vpop.permute.xlu1 %325 }
  0x9a   : > { %v416_v19 = vsel %vm415_vm0, %v410_v10, %v412_v13  ;;  %v330_v24 = vsel %vm329_vm2, %v324_v11, %v326_v14 }
  0x9d   : > { %v414_v15 = vpop.permute.xlu0 %413  ;;  %v860_v16 = vpop.permute.xlu1 %859 }
  0x9e   : > { %v417_v17 = vsel %vm415_vm0, %v412_v13, %v414_v15 }
  0x9f   : > { %423 = vmatprep.subr.mxu0 %v417_v17 }
  0xa0   : > { %424 = vmatpush1.msra.mxu0 %v416_v19 }
  0xa1   : > { %v328_v20 = vpop.permute.xlu0 %327  ;;  %1281 = vmatmul.mubr.msk.f32.vlgmr.msra.gmra.mrb[0].mxu0 %vm334_vm1, %v317_v18  ;;  %v858_v21 = vpop.permute.xlu1 %857 }
  0xa2   : > { %v331_v22 = vsel %vm329_vm2, %v326_v14, %v328_v20  ;;  %580 = vmatprep.mubr.f32.mxu0 %v1443_v0  ;;  %v864_v36 = vsel %vm863_vm4, %v858_v21, %v860_v16 }
  0xa3   : > { %338 = vmatprep.subr.mxu1 %v331_v22 }
  0xa4   : > { %339 = vmatpush1.msra.mxu1 %v330_v24 }
  0xa5   : > { %v505_v25 = vpop.permute.xlu0 %504  ;;  %1280 = vmatmul.mubr.msk.f32.vlgmr.msra.gmra.mrb[0].mxu1 %vm334_vm1, %v1279_v23  ;;  %606 = vmatprep.subr.mxu1 %v316_v6  ;;  %v682_v27 = vpop.permute.xlu1 %681  ;;  %v294_v6 = vand.u32 15, %v288_v4 }
  0xa6   : > { %v510_v26 = vsel %vm508_vm3, %v505_v25, %v507_v12  ;;  %607 = vmatpush1.msra.mxu1 %v1565_v5  ;;  %670 = vmatprep.mubr.f32.mxu1 %v1443_v0  ;;  %v289_v5 = vadd.s32 128, %v288_v4 }
  0xa7   : > { %516 = vmatprep.subr.mxu0 %v510_v26  ;;  %vm589_vm9 = vcmp.ne.s32.totalorder %v294_v6, 0  ;;  %vm1116_vm11 = vcmp.ne.s32.totalorder %v294_v6, 15 }
  0xa8   : > { %v301_v7 = vand.u32 15, %v289_v5 }
  0xa9   : > { %v503_v29 = vpop.permute.xlu0 %502  ;;  %1286 = vmatmul.mubr.msk.f32.vlgmr.msra.gmra.mrb[2].mxu1 %vm334_vm1, %v1285_v28  ;;  %v945_v32 = vpop.permute.xlu1 %944 }
  0xaa   : > { %v509_v31 = vsel %vm508_vm3, %v503_v29, %v505_v25  ;;  %755 = vmatprep.mubr.f32.mxu1 %v1443_v0  ;;  %vm590_vm10 = vcmp.ne.s32.totalorder %v301_v7, 0  ;;  %vm1117_vm12 = vcmp.ne.s32.totalorder %v301_v7, 15 }
  0xab   : > { %517 = vmatpush1.msra.mxu0 %v509_v31 }
  0xac   : > { %1283 = vmatmul.mubr.msk.f32.vlgmr.msra.gmra.mrb[0].mxu0 %vm334_vm1, %v1282_v30 }
  0xad   : > { %v862_v33 = vpop.permute.xlu0 %861  ;;  %935 = vmatprep.mubr.f32.mxu0 %v1443_v0  ;;  %v943_v39 = vpop.permute.xlu1 %942 }
  0xae   : > { %v865_v34 = vsel %vm863_vm4, %v860_v16, %v862_v33  ;;  %v949_v47 = vsel %vm948_vm6, %v943_v39, %v945_v32  ;;  %v1160_v39 = vstv %s1159_s16 }
  0xaf   : > { %871 = vmatprep.subr.mxu0 %v865_v34 }
  0xb0   : > { %872 = vmatpush1.msra.mxu0 %v864_v36 }
  0xb1   : > { %v680_v37 = vpop.permute.xlu0 %679  ;;  %1292 = vmatmul.mubr.msk.f32.vlgmr.msra.gmra.mrb[2].mxu0 %vm334_vm1, %v1291_v35  ;;  %v769_v43 = vpop.permute.xlu1 %768 }
  0xb2   : > { %v685_v38 = vsel %vm683_vm5, %v680_v37, %v682_v27  ;;  %1020 = vmatprep.mubr.f32.mxu0 %v1443_v0 }
  0xb3   : > { %691 = vmatprep.subr.mxu1 %v685_v38 }
  0xb5   : > { %v678_v40 = vpop.permute.xlu0 %677  ;;  %v1032_v49 = vpop.permute.xlu1 %1031 }
  0xb6   : > { %v684_v42 = vsel %vm683_vm5, %v678_v40, %v680_v37 }
  0xb7   : > { %692 = vmatpush1.msra.mxu1 %v684_v42 }
  0xb8   : > { %1287 = vmatmul.mubr.msk.f32.vlgmr.msra.gmra.mrb[2].mxu1 %vm334_vm1, %v1284_v41 }
  0xb9   : > { %v947_v44 = vpop.permute.xlu0 %946  ;;  %842 = vmatprep.mubr.f32.mxu1 %v1443_v0  ;;  %v1030_v54 = vpop.permute.xlu1 %1029 }
  0xba   : > { %v950_v45 = vsel %vm948_vm6, %v945_v32, %v947_v44  ;;  %v1036_v58 = vsel %vm1035_vm8, %v1030_v54, %v1032_v49 }
  0xbb   : > { %956 = vmatprep.subr.mxu0 %v950_v45 }
  0xbc   : > { %957 = vmatpush1.msra.mxu0 %v949_v47 }
  0xbd   : > { %v767_v48 = vpop.permute.xlu0 %766  ;;  %1293 = vmatmul.mubr.msk.f32.vlgmr.msra.gmra.mrb[2].mxu0 %vm334_vm1, %v1290_v46 }
  0xbe   : > { %v772_v50 = vsel %vm770_vm7, %v767_v48, %v769_v43  ;;  %1107 = vmatprep.mubr.f32.mxu0 %v1443_v0 }
  0xbf   : > { %778 = vmatprep.subr.mxu1 %v772_v50 }
  0xc1   : > { %v765_v51 = vpop.permute.xlu0 %764 }
  0xc2   : > { %v771_v53 = vsel %vm770_vm7, %v765_v51, %v767_v48 }
  0xc3   : > { %779 = vmatpush1.msra.mxu1 %v771_v53 }
  0xc4   : > { %1289 = vmatmul.mubr.msk.f32.vlgmr.msra.gmra.mrb[2].mxu1 %vm334_vm1, %v1288_v52 }
  0xc5   : > { %v1034_v55 = vpop.permute.xlu0 %1033 }
  0xc6   : > { %v1037_v56 = vsel %vm1035_vm8, %v1032_v49, %v1034_v55 }
  0xc7   : > { %1043 = vmatprep.subr.mxu0 %v1037_v56 }
  0xc8   : > { %1044 = vmatpush1.msra.mxu0 %v1036_v58 }
  0xc9   : > { %1295 = vmatmul.mubr.msk.f32.vlgmr.msra.gmra.mrb[2].mxu0 %vm334_vm1, %v1294_v57 }
  0xca   : > { %v1140_v23 = vpop.permute.xlu1 %1139 }
  0xd6   : > { %v1130_v17 = vpop.permute.xlu0 %1129 }
 0x178   : > { %v404_v59 = vpop.f32.mrb[0].mxu1 }
 0x179   : > { %v406_v60 = vpop.f32.mrb[1].mxu1 }
 0x17f   : > { %v582_v61 = vpop.f32.mrb[0].mxu0 }
 0x180   : > { %v1306_v62 = vadd.f32 %v582_v61, %v404_v59  ;;  %v584_v63 = vpop.f32.mrb[1].mxu0 }
 0x181   : > { %v1307_v0 = vadd.f32 %v584_v63, %v406_v60 }
 0x182   : > { %v595_v8 = vsel %vm589_vm9, %v1306_v62, 0.0 }
 0x183   : > { %v596_v11 = vsel %vm590_vm10, %v1307_v0, 0.0 }
 0x197   : > { %v844_v9 = vpop.f32.mrb[2].mxu1 }
 0x198   : > { %v851_v10 = vadd.f32 %v844_v9, %v595_v8  ;;  %v846_v12 = vpop.f32.mrb[3].mxu1 }
 0x199   : > { %v852_v13 = vadd.f32 %v846_v12, %v596_v11 }
 0x19c   : > { %v1109_v14 = vpop.f32.mrb[2].mxu0 }
 0x19d   : > { %v1122_v15 = vsel %vm1116_vm11, %v1109_v14, 0.0  ;;  %v1111_v16 = vpop.f32.mrb[3].mxu0 }
 0x19e   : > { %v1124_v18 = vadd.f32 %v1122_v15, %v851_v10  ;;  %v1123_v19 = vsel %vm1117_vm12, %v1111_v16, 0.0 }
 0x19f   : > { %v1125_v20 = vadd.f32 %v1123_v19, %v852_v13 }
 0x1a0   : > { %v1132_v21 = vadd.f32 %v1130_v17, %v1124_v18 }
 0x1a1   : > { %v1133_v22 = vadd.f32 %v1130_v17, %v1125_v20 }
 0x1a2   : > { %v1134_v24 = vmax.f32 %v1132_v21, 0.0 }
 0x1a3   : > { %v1135_v25 = vmax.f32 %v1133_v22, 0.0 }
 0x1a4   : > { %v1142_v26 = vmul.f32 %v1140_v23, %v1134_v24 }
 0x1a5   : > { %v1143_v27 = vmul.f32 %v1140_v23, %v1135_v25 }
 0x1a6   : > { %v1145_v28 = vsel %vm1144_vm13, %v1142_v26, 0.0 }
 0x1a7   : > { %v1146_v29 = vrot.slane %v1145_v28, 4  ;;  %v1152_v30 = vsel %vm1144_vm13, %v1143_v27, 0.0 }
 0x1a8   : > { %v1153_v31 = vrot.slane %v1152_v30, 4 }
 0x1a9   : > { %v1147_v32 = vadd.f32 %v1146_v29, %v1145_v28 }
 0x1aa   : > { %v1154_v33 = vadd.f32 %v1153_v31, %v1152_v30 }
 0x1ab   : > { %v1148_v34 = vrot.slane %v1147_v32, 2 }
 0x1ac   : > { %v1155_v35 = vrot.slane %v1154_v33, 2 }
 0x1ad   : > { %v1149_v36 = vadd.f32 %v1148_v34, %v1147_v32 }
 0x1ae   : > { %v1156_v37 = vadd.f32 %v1155_v35, %v1154_v33 }
 0x1af   : > { %v1150_v38 = vrot.slane %v1149_v36, 1 }
 0x1b0   : > { %v1157_v40 = vrot.slane %v1156_v37, 1 }
 0x1b1   : > { %v1151_v41 = vadd.f32 %v1150_v38, %v1149_v36 }
 0x1b2   : > { %v1158_v42 = vadd.f32 %v1157_v40, %v1156_v37 }
 0x1b3   : > { %v1161_v43 = vadd.f32 %v1160_v39, %v1151_v41 }
 0x1b4   : > { %v1162_v44 = vadd.f32 %v1160_v39, %v1158_v42 }
 0x1b5   : > { %v1296_v45 = vmul.f32 -1.442695, %v1161_v43 }
 0x1b6   : > { %v1297_v46 = vmul.f32 -1.442695, %v1162_v44 }
 0x1b7   : > { %1371 = vpow2.f32 %v1296_v45 }
 0x1b8   : > { %1373 = vpow2.f32 %v1297_v46 }
 0x1c1   : > { %v1372_v47 = vpop.eup %1371 }
 0x1c2   : > { %v1374_v48 = vpop.eup %1373  ;;  %v1169_v49 = vadd.f32 1.0, %v1372_v47 }
 0x1c3   : > { %v1170_v50 = vadd.f32 1.0, %v1374_v48 }
 0x1c4   : > { %1375 = vrcp.f32 %v1169_v49 }
 0x1c5   : > { %1377 = vrcp.f32 %v1170_v50 }
 0x1ce   : > { %v1376_v51 = vpop.eup %1375 }
 0x1cf   : > { %v1378_v52 = vpop.eup %1377 }
 0x1d0   : > { %v1179_v53 = vcombine.low %v1376_v51, %v1378_v52 }
 0x1d2   : > { %v1181_v54 = vmul.f32 %v1179_v53, %v1556_v2 }
 0x1d4   : > { %v1182_v55 = vadd.f32 %v1181_v54, %v1554_v1 }
 0x1d6   : > { %1183 = vst [vmem:[%s260_s20] sm:$0xff] %v1182_v55 }
 0x1d7   : > { %1392 = shalt.err (!%p1389_p3)
}
 0x1d8   : > { %s1393_s13 = scalar_lea.hbm %s1637_s29, 128  ;;  %s1397_s16 = scalar_lea.hbm %s1685_s6, 256 }
 0x1d9   : > { %p1394_p4 = scmp.ne.s32.totalorder %s1637_s29, %s1393_s13  ;;  %p1398_p9 = scmp.lt.u32.totalorder %s1637_s29, %s1685_s6 }
 0x1da   : > { %p1399_p10 = scmp.lt.u32.totalorder %s1397_s16, %s1393_s13  ;;  %p1401_p12 = scmp.lt.u32.totalorder %s1393_s13, %s1637_s29 }
 0x1db   : > { %p1395_p7 = pnand %p1394_p4, %p1530_p5 }
 0x1dc   : > { %p1400_p11 = por %p1399_p10, %p1398_p9 }
 0x1dd   : > { %p1396_p8 = pneg %p1395_p7 }
 0x1de   : > { %p1402_p13 = por %p1401_p12, %p1400_p11 }
 0x1e0   : > { %p1403_p0 = pnand %p1402_p13, %p1396_p8 }
 0x1e2   : > { %1406 = shalt.err (!%p1403_p0)
}
 0x1e3   : > { %1318 = dma.vmem_to_hbm [thread:$0]  (%p1530_p5), %s1639_s21, 128, %s1637_s29, %s1185_s30  }
 0x1e4 PF: > { %p1324_p1 = scmp.ge.s32.totalorder %s1441_s26, 2  ;;  %s1211_s19 = sand.u32 1, %s1429_s23  }
 0x1e5   : > { %s1212_s20 = scalar_lea.sflag [#allocation5], %s1211_s19 }
 0x1e6   : > { %p1321_p2 = pnand %p1324_p1, %p1534_p6 }
 0x1e8   : > { %1424 = dma.done.wait (!%p1321_p2), %s1212_s20, 128  }
 0x1e9   : > { %1426 = vsyncadd (!%p1321_p2), %s1212_s20, 4294967168  ;;  %p17_p3 = scmp.ge.s32.totalorder %s1517_s28, 4   ;;  %s1688_s23 = smov %s1433_s24 }
 0x1ea   : > { %s1689_s24 = smov %s1437_s25  ;;  %s1690_s25 = smov %s1528_s7 }
 0x1eb   : > { %s1691_s26 = smov %s1517_s28  ;;  %19 = sbr.rel (!%p17_p3) target bundleno = 5 (0x5), region = 90 }
 0x1f2   :  { %1217 = vsyncpa [#allocation5], 1 }
 0x1f3   :  { %1219 = vsyncpa [#allocation5 + $0x1], 1 }

</bundles_post_ra>
